<compile_context>
chip_gen: v7x
topology: tpu7x:2x2x1
jax: 0.10.0
libtpu: 0.0.40
codegen_flags: <defaults>
</compile_context>

<pallas_src>
import functools

import jax
import jax.numpy as jnp
from jax.experimental import pallas as pl


# ----------------------------------------------------------------------------
# Helpers
# ----------------------------------------------------------------------------
def _round_up(x, m):
    return ((x + m - 1) // m) * m


def _full_spec(shape):
    # Whole-array block resident in VMEM (everything here is a few KiB).
    return pl.BlockSpec(shape, lambda: (0,) * len(shape))


# ----------------------------------------------------------------------------
# Fused Pallas kernel: 2 hetero SAGEConv layers + classifier dot product
# ----------------------------------------------------------------------------
def _fused_forward_kernel(a_ref, invdeg_ref, x0_ref, w_ref, b_ref, sel_ref, o_ref,
                          *, n_dis, h, e_pad):
    f32 = jnp.float32
    bf16 = jnp.bfloat16
    two_h = 2 * h

    a = a_ref[...]          # (n_tot, n_tot) bf16 integer edge counts, anti-block-diag
    inv_deg = invdeg_ref[...]  # (n_tot, 1) f32   1 / max(in_degree, 1)
    w = w_ref[...]          # (4*2h, h) bf16  [L1-dis, L1-gene, L2-dis, L2-gene] blocks
    b = b_ref[...]          # (4, h)   f32    lin_l biases in the same block order

    def layer(x_in, l, relu, out_dtype):
        # One matmul aggregates messages for BOTH edge types / dst node types.
        agg = jnp.dot(a, x_in, preferred_element_type=f32)     # (n_tot, h) summed msgs
        agg = (agg * inv_deg).astype(bf16)                      # exact f32 mean, then bf16
        cat = jnp.concatenate([agg, x_in], axis=-1)             # (n_tot, 2h) [agg | root]

        def conv(rows, blk):
            # Fused lin_l + lin_r: [agg | root] @ [W_l^T ; W_r^T]  (+ lin_l bias)
            out = jnp.dot(rows, w[blk * two_h:(blk + 1) * two_h, :],
                          preferred_element_type=f32)
            out = out + b[blk:blk + 1, :]
            if relu:
                out = jnp.maximum(out, 0.0)
            return out

        out_d = conv(cat[:n_dis, :], 2 * l + 0)   # disease dst <- ('gene','gda','disease')
        out_g = conv(cat[n_dis:, :], 2 * l + 1)   # gene dst    <- ('disease','rev_gda','gene')
        return jnp.concatenate([out_d, out_g], axis=0).astype(out_dtype)

    x1 = layer(x0_ref[...], 0, True, bf16)        # layer 1 (+ relu)
    x2 = layer(x1, 1, False, f32)                 # layer 2 (no activation)

    # Classifier: one lane-stacked selection matmul produces both endpoint
    # feature slabs as (h, 2*E_pad); the sublane reduce lands directly in the
    # lane-dense (1, E_pad) output row.
    x2t = jnp.transpose(x2).astype(bf16)                              # (h, n_tot)
    feat = jnp.dot(x2t, sel_ref[...], preferred_element_type=f32)     # (h, 2*E_pad)
    o_ref[...] = jnp.sum(feat[:, :e_pad] * feat[:, e_pad:], axis=0, keepdims=True)


# ----------------------------------------------------------------------------
# Wrapper
# ----------------------------------------------------------------------------
def model_forward(params, gene_node_id, disease_node_id,
                  edge_index_gda, edge_label_index):
    bf16 = jnp.bfloat16
    f32 = jnp.float32

    # Embedding lookups (gather glue).
    x_gene = params["gene_emb"][gene_node_id]        # (n_gene, h) f32
    x_dis = params["disease_emb"][disease_node_id]   # (n_dis,  h) f32
    n_gene, h = x_gene.shape
    n_dis = x_dis.shape[0]

    # Pad each node-type block to a sublane multiple so in-kernel slices are aligned.
    n_dis_p = _round_up(n_dis, 8)
    n_gene_p = _round_up(n_gene, 8)
    n_tot = n_dis_p + n_gene_p

    # Stacked node features [x_dis ; x_gene] (padded rows are zero -> harmless).
    x0 = jnp.zeros((n_tot, h), f32)
    x0 = x0.at[:n_dis].set(x_dis).at[n_dis_p:n_dis_p + n_gene].set(x_gene)
    x0 = x0.astype(bf16)

    # Anti-block-diagonal adjacency of RAW edge counts (exact in bf16) so one
    # matmul aggregates both edge types.  Mean scale 1/deg stays f32.
    # TODO(synk): dense adjacency + one-hot selection are only appropriate at toy
    # graph sizes and, if edge indices are static across steps, should be built
    # once outside the jit; a sparse segment-sum formulation is needed at scale.
    src_g = edge_index_gda[0]
    dst_d = edge_index_gda[1]
    a = jnp.zeros((n_tot, n_tot), f32)
    a = a.at[dst_d, n_dis_p + src_g].add(1.0)        # gene -> disease messages
    a = a.at[n_dis_p + src_g, dst_d].add(1.0)        # disease -> gene (rev) messages
    deg = a.sum(axis=1, keepdims=True)
    inv_deg = 1.0 / jnp.maximum(deg, 1.0)            # (n_tot, 1) f32
    a = a.astype(bf16)

    # Weight slab: 4 blocks of (2h, h) = [W_l^T ; W_r^T] per (layer, dst-type).
    def cat_conv(conv):
        w_l, w_r, _ = conv
        return jnp.concatenate([w_l.T, w_r.T], axis=0)   # (2h, h), agg rows then root rows

    w_slab = jnp.concatenate(
        [cat_conv(params["conv1_gda"]), cat_conv(params["conv1_rev"]),
         cat_conv(params["conv2_gda"]), cat_conv(params["conv2_rev"])],
        axis=0).astype(bf16)                              # (8h, h)
    b_slab = jnp.stack(
        [params["conv1_gda"][2], params["conv1_rev"][2],
         params["conv2_gda"][2], params["conv2_rev"][2]],
        axis=0).astype(f32)                               # (4, h)

    # Transposed one-hot selection slab, lane-stacked: cols [0, E_pad) pick the
    # disease endpoint, cols [E_pad, 2*E_pad) pick the gene endpoint.
    e = edge_label_index.shape[1]
    e_pad = max(128, _round_up(e, 128))
    edges = jnp.arange(e)
    sel = jnp.zeros((n_tot, 2 * e_pad), f32)
    sel = sel.at[edge_label_index[1], edges].set(1.0)
    sel = sel.at[n_dis_p + edge_label_index[0], e_pad + edges].set(1.0)
    sel = sel.astype(bf16)

    kernel = functools.partial(_fused_forward_kernel,
                               n_dis=n_dis_p, h=h, e_pad=e_pad)
    args = (a, inv_deg, x0, w_slab, b_slab, sel)
    out = pl.pallas_call(
        kernel,
        out_shape=jax.ShapeDtypeStruct((1, e_pad), jnp.float32),
        in_specs=[_full_spec(arg.shape) for arg in args],
        out_specs=_full_spec((1, e_pad)),
    )(*args)
    return out[0, :e]


# ----------------------------------------------------------------------------
# Parameter init (PyTorch-style layouts kept in the param dict)
# ----------------------------------------------------------------------------
def _linear_init(key, out_f, in_f, bias=True):
    k_w, k_b = jax.random.split(key)
    bound = 1.0 / jnp.sqrt(jnp.float32(in_f))
    w = jax.random.uniform(k_w, (out_f, in_f), jnp.float32, -bound, bound)
    if bias:
        b = jax.random.uniform(k_b, (out_f,), jnp.float32, -bound, bound)
        return w, b
    return w


def _sage_conv_init(key, h):
    k_l, k_r = jax.random.split(key)
    w_l, b_l = _linear_init(k_l, h, h, bias=True)   # lin_l (on aggregated msgs)
    w_r = _linear_init(k_r, h, h, bias=False)       # lin_r (root weight, no bias)
    return (w_l, w_r, b_l)


def init_params(key, hidden, n_gene, n_disease):
    ks = jax.random.split(key, 7)
    # TODO(synk): Model.__init__ also creates self.lin = Linear(20, hidden) which
    # is unused in forward(); it is intentionally omitted here.
    return {
        "gene_emb": jax.random.normal(ks[0], (n_gene, hidden), jnp.float32),
        "disease_emb": jax.random.normal(ks[1], (n_disease, hidden), jnp.float32),
        "conv1_gda": _sage_conv_init(ks[2], hidden),   # ('gene','gda','disease')
        "conv1_rev": _sage_conv_init(ks[3], hidden),   # ('disease','rev_gda','gene')
        "conv2_gda": _sage_conv_init(ks[4], hidden),
        "conv2_rev": _sage_conv_init(ks[5], hidden),
    }


# ----------------------------------------------------------------------------
# Main
# ----------------------------------------------------------------------------
if __name__ == "__main__":
    HIDDEN = 32
    N_GENE, N_DISEASE = 40, 24
    E_MSG, E_LABEL = 96, 16

    key = jax.random.PRNGKey(0)
    k_params, k_e0, k_e1, k_l0, k_l1 = jax.random.split(key, 5)

    params = init_params(k_params, HIDDEN, N_GENE, N_DISEASE)

    gene_node_id = jnp.arange(N_GENE, dtype=jnp.int32)
    disease_node_id = jnp.arange(N_DISEASE, dtype=jnp.int32)

    # message-passing edges ('gene','gda','disease'): row 0 = gene idx, row 1 = disease idx
    edge_index_gda = jnp.stack([
        jax.random.randint(k_e0, (E_MSG,), 0, N_GENE, dtype=jnp.int32),
        jax.random.randint(k_e1, (E_MSG,), 0, N_DISEASE, dtype=jnp.int32),
    ])
    # supervision edges for the classifier
    edge_label_index = jnp.stack([
        jax.random.randint(k_l0, (E_LABEL,), 0, N_GENE, dtype=jnp.int32),
        jax.random.randint(k_l1, (E_LABEL,), 0, N_DISEASE, dtype=jnp.int32),
    ])

    pred = jax.jit(model_forward)(params, gene_node_id, disease_node_id,
                                  edge_index_gda, edge_label_index)
    pred = jax.block_until_ready(pred)
    assert pred.shape == (E_LABEL,) and pred.dtype == jnp.float32
    print("KERNEL_OK")
</pallas_src>

<mosaic_0001>
module attributes {stable_mosaic.version = 11 : i64} {
  func.func private @main(%arg0: i32) attributes {dimension_semantics = [#tpu.dimension_semantics<core_parallel>], iteration_bounds = array<i64: 2>, tpu.core_type = #tpu.core_type<sc_scalar_subcore>, window_params = []} {
    return
  }
}

module attributes {stable_mosaic.version = 11 : i64} {
  func.func private @main(%arg0: i32) attributes {dimension_semantics = [#tpu.dimension_semantics<core_parallel>], iteration_bounds = array<i64: 2>, tpu.core_type = #tpu.core_type<sc_scalar_subcore>, window_params = []} {
    return
  }
}

module attributes {stable_mosaic.version = 11 : i64} {
  func.func @_fused_forward_kernel(%arg0: memref<64x64xbf16, #tpu.memory_space<vmem>>, %arg1: memref<64x1xf32, #tpu.memory_space<vmem>>, %arg2: memref<64x32xbf16, #tpu.memory_space<vmem>>, %arg3: memref<256x32xbf16, #tpu.memory_space<vmem>>, %arg4: memref<4x32xf32, #tpu.memory_space<vmem>>, %arg5: memref<64x256xbf16, #tpu.memory_space<vmem>>, %arg6: memref<1x128xf32, #tpu.memory_space<vmem>>) attributes {dimension_semantics = [], scalar_prefetch = 0 : i64, scratch_operands = 0 : i64, tpu.core_type = #tpu.core_type<tc>} {
    %c0 = arith.constant 0 : index
    %c0_0 = arith.constant 0 : index
    %0 = vector.load %arg0[%c0, %c0_0] : memref<64x64xbf16, #tpu.memory_space<vmem>>, vector<64x64xbf16>
    %c0_1 = arith.constant 0 : index
    %c0_2 = arith.constant 0 : index
    %1 = vector.load %arg1[%c0_1, %c0_2] : memref<64x1xf32, #tpu.memory_space<vmem>>, vector<64x1xf32>
    %c0_3 = arith.constant 0 : index
    %c0_4 = arith.constant 0 : index
    %2 = vector.load %arg3[%c0_3, %c0_4] : memref<256x32xbf16, #tpu.memory_space<vmem>>, vector<256x32xbf16>
    %c0_5 = arith.constant 0 : index
    %c0_6 = arith.constant 0 : index
    %3 = vector.load %arg4[%c0_5, %c0_6] : memref<4x32xf32, #tpu.memory_space<vmem>>, vector<4x32xf32>
    %c0_7 = arith.constant 0 : index
    %c0_8 = arith.constant 0 : index
    %4 = vector.load %arg2[%c0_7, %c0_8] : memref<64x32xbf16, #tpu.memory_space<vmem>>, vector<64x32xbf16>
    %cst = arith.constant dense<0.000000e+00> : vector<64x32xf32>
    %5 = tpu.matmul %0, %4, %cst {dimension_numbers = #tpu.dot_dimension_numbers<[1], [0], [0], [1], [0, 0, 1, 1], [], []>} : vector<64x64xbf16>, vector<64x32xbf16>, vector<64x32xf32> -> vector<64x32xf32>
    %6 = vector.broadcast %1 : vector<64x1xf32> to vector<64x32xf32>
    %7 = arith.mulf %5, %6 : vector<64x32xf32>
    %8 = arith.truncf %7 : vector<64x32xf32> to vector<64x32xbf16>
    %9 = tpu.concatenate %8, %4 in 1 : vector<64x32xbf16>, vector<64x32xbf16> -> vector<64x64xbf16>
    %10 = vector.extract_strided_slice %9 {offsets = [0, 0], sizes = [24, 64], strides = [1, 1]} : vector<64x64xbf16> to vector<24x64xbf16>
    %11 = vector.extract_strided_slice %2 {offsets = [0, 0], sizes = [64, 32], strides = [1, 1]} : vector<256x32xbf16> to vector<64x32xbf16>
    %cst_9 = arith.constant dense<0.000000e+00> : vector<24x32xf32>
    %12 = tpu.matmul %10, %11, %cst_9 {dimension_numbers = #tpu.dot_dimension_numbers<[1], [0], [0], [1], [0, 0, 1, 1], [], []>} : vector<24x64xbf16>, vector<64x32xbf16>, vector<24x32xf32> -> vector<24x32xf32>
    %13 = vector.extract_strided_slice %3 {offsets = [0, 0], sizes = [1, 32], strides = [1, 1]} : vector<4x32xf32> to vector<1x32xf32>
    %14 = vector.broadcast %13 : vector<1x32xf32> to vector<24x32xf32>
    %15 = arith.addf %12, %14 : vector<24x32xf32>
    %cst_10 = arith.constant 0.000000e+00 : f32
    %16 = vector.broadcast %cst_10 : f32 to vector<24x32xf32>
    %17 = arith.maximumf %15, %16 : vector<24x32xf32>
    %18 = vector.extract_strided_slice %9 {offsets = [24, 0], sizes = [40, 64], strides = [1, 1]} : vector<64x64xbf16> to vector<40x64xbf16>
    %19 = vector.extract_strided_slice %2 {offsets = [64, 0], sizes = [64, 32], strides = [1, 1]} : vector<256x32xbf16> to vector<64x32xbf16>
    %cst_11 = arith.constant dense<0.000000e+00> : vector<40x32xf32>
    %20 = tpu.matmul %18, %19, %cst_11 {dimension_numbers = #tpu.dot_dimension_numbers<[1], [0], [0], [1], [0, 0, 1, 1], [], []>} : vector<40x64xbf16>, vector<64x32xbf16>, vector<40x32xf32> -> vector<40x32xf32>
    %21 = vector.extract_strided_slice %3 {offsets = [1, 0], sizes = [1, 32], strides = [1, 1]} : vector<4x32xf32> to vector<1x32xf32>
    %22 = vector.broadcast %21 : vector<1x32xf32> to vector<40x32xf32>
    %23 = arith.addf %20, %22 : vector<40x32xf32>
    %cst_12 = arith.constant 0.000000e+00 : f32
    %24 = vector.broadcast %cst_12 : f32 to vector<40x32xf32>
    %25 = arith.maximumf %23, %24 : vector<40x32xf32>
    %26 = tpu.concatenate %17, %25 in 0 : vector<24x32xf32>, vector<40x32xf32> -> vector<64x32xf32>
    %27 = arith.truncf %26 : vector<64x32xf32> to vector<64x32xbf16>
    %cst_13 = arith.constant dense<0.000000e+00> : vector<64x32xf32>
    %28 = tpu.matmul %0, %27, %cst_13 {dimension_numbers = #tpu.dot_dimension_numbers<[1], [0], [0], [1], [0, 0, 1, 1], [], []>} : vector<64x64xbf16>, vector<64x32xbf16>, vector<64x32xf32> -> vector<64x32xf32>
    %29 = vector.broadcast %1 : vector<64x1xf32> to vector<64x32xf32>
    %30 = arith.mulf %28, %29 : vector<64x32xf32>
    %31 = arith.truncf %30 : vector<64x32xf32> to vector<64x32xbf16>
    %32 = tpu.concatenate %31, %27 in 1 : vector<64x32xbf16>, vector<64x32xbf16> -> vector<64x64xbf16>
    %33 = vector.extract_strided_slice %32 {offsets = [0, 0], sizes = [24, 64], strides = [1, 1]} : vector<64x64xbf16> to vector<24x64xbf16>
    %34 = vector.extract_strided_slice %2 {offsets = [128, 0], sizes = [64, 32], strides = [1, 1]} : vector<256x32xbf16> to vector<64x32xbf16>
    %cst_14 = arith.constant dense<0.000000e+00> : vector<24x32xf32>
    %35 = tpu.matmul %33, %34, %cst_14 {dimension_numbers = #tpu.dot_dimension_numbers<[1], [0], [0], [1], [0, 0, 1, 1], [], []>} : vector<24x64xbf16>, vector<64x32xbf16>, vector<24x32xf32> -> vector<24x32xf32>
    %36 = vector.extract_strided_slice %3 {offsets = [2, 0], sizes = [1, 32], strides = [1, 1]} : vector<4x32xf32> to vector<1x32xf32>
    %37 = vector.broadcast %36 : vector<1x32xf32> to vector<24x32xf32>
    %38 = arith.addf %35, %37 : vector<24x32xf32>
    %39 = vector.extract_strided_slice %32 {offsets = [24, 0], sizes = [40, 64], strides = [1, 1]} : vector<64x64xbf16> to vector<40x64xbf16>
    %40 = vector.extract_strided_slice %2 {offsets = [192, 0], sizes = [64, 32], strides = [1, 1]} : vector<256x32xbf16> to vector<64x32xbf16>
    %cst_15 = arith.constant dense<0.000000e+00> : vector<40x32xf32>
    %41 = tpu.matmul %39, %40, %cst_15 {dimension_numbers = #tpu.dot_dimension_numbers<[1], [0], [0], [1], [0, 0, 1, 1], [], []>} : vector<40x64xbf16>, vector<64x32xbf16>, vector<40x32xf32> -> vector<40x32xf32>
    %42 = vector.extract_strided_slice %3 {offsets = [3, 0], sizes = [1, 32], strides = [1, 1]} : vector<4x32xf32> to vector<1x32xf32>
    %43 = vector.broadcast %42 : vector<1x32xf32> to vector<40x32xf32>
    %44 = arith.addf %41, %43 : vector<40x32xf32>
    %45 = tpu.concatenate %38, %44 in 0 : vector<24x32xf32>, vector<40x32xf32> -> vector<64x32xf32>
    %46 = tpu.transpose %45, [1, 0] : vector<64x32xf32> -> vector<32x64xf32>
    %47 = arith.truncf %46 : vector<32x64xf32> to vector<32x64xbf16>
    %c0_16 = arith.constant 0 : index
    %c0_17 = arith.constant 0 : index
    %48 = vector.load %arg5[%c0_16, %c0_17] : memref<64x256xbf16, #tpu.memory_space<vmem>>, vector<64x256xbf16>
    %cst_18 = arith.constant dense<0.000000e+00> : vector<32x256xf32>
    %49 = tpu.matmul %47, %48, %cst_18 {dimension_numbers = #tpu.dot_dimension_numbers<[1], [0], [0], [1], [0, 0, 1, 1], [], []>} : vector<32x64xbf16>, vector<64x256xbf16>, vector<32x256xf32> -> vector<32x256xf32>
    %50 = vector.extract_strided_slice %49 {offsets = [0, 0], sizes = [32, 128], strides = [1, 1]} : vector<32x256xf32> to vector<32x128xf32>
    %51 = vector.extract_strided_slice %49 {offsets = [0, 128], sizes = [32, 128], strides = [1, 1]} : vector<32x256xf32> to vector<32x128xf32>
    %52 = arith.mulf %50, %51 : vector<32x128xf32>
    %cst_19 = arith.constant dense<0.000000e+00> : vector<128xf32>
    %53 = vector.multi_reduction <add>, %52, %cst_19 [0] : vector<32x128xf32> to vector<128xf32>
    %54 = vector.shape_cast %53 : vector<128xf32> to vector<1x128xf32>
    %c0_20 = arith.constant 0 : index
    %c0_21 = arith.constant 0 : index
    %55 = vector.load %arg6[%c0_20, %c0_21] : memref<1x128xf32, #tpu.memory_space<vmem>>, vector<1x128xf32>
    tpu.vector_store %arg6[%c0_20, %c0_21], %54 {strides = array<i32>} : memref<1x128xf32, #tpu.memory_space<vmem>>, vector<1x128xf32>,
    return
  }
}

</mosaic_0001>

<bundles_post_ra>
// kernel: model_forward.1
= control target key start
LH: loop header
LB: loop body
LE: loop exit
PB: predicated region body
PF: predicated region fallthrough
CT: control target
= control target key end

     0   :  { %v1143_v1 = vmov 0   ;;  %vm125_vm0 = vcmask 523264   ;;  %v1145_v21 = vmov 0.0   ;;  %vm1146_vm1 = vmmov 0   ;;  %s1432_s2 = inlined_call_operand.vmem [shape: bf16[64,32], index: 2, kind: input, shape index: {}]   ;;  %s1433_s0 = inlined_call_operand.vmem [shape: bf16[64,64], index: 0, kind: input, shape index: {}]   ;;  %s1434_s1 = inlined_call_operand.vmem [shape: f32[64,1], index: 1, kind: input, shape index: {}]   ;;  %s1435_s3 = inlined_call_operand.vmem [shape: bf16[256,32], index: 3, kind: input, shape index: {}]   ;;  %s1436_s4 = inlined_call_operand.vmem [shape: f32[4,32], index: 4, kind: input, shape index: {}]   ;;  %s1437_s5 = inlined_call_operand.vmem [shape: bf16[64,256], index: 5, kind: input, shape index: {}]   ;;  %s1438_s6 = inlined_call_operand.vmem [shape: f32[1,128], index: 6, kind: output, shape index: {}]  }
   0x1   :  { %v1107_v0 = vld [vmem:[%s1432_s2] sm:$0xff]   ;;  %1105 = vset.pattern.permute.xlu0 %v1143_v1  ;;  %1106 = vset.pattern.permute.xlu1 %v1143_v1  ;;  %v1108_v2 = vld [vmem:[%s1432_s2 + $0x8] sm:$0xff]   ;;  %v1109_v3 = vld [vmem:[%s1432_s2 + $0x10] sm:$0xff]   ;;  %vm263_vm2 = vcmask 261120   ;;  %vm366_vm3 = vcmask 1043456  }
   0x2   :  { %1005 = vmatprep.subr.bf16.mxu0 %v1107_v0  ;;  %v1196_v4 = vld [vmem:[%s1433_s0] sm:$0xff]   ;;  %v1110_v5 = vld [vmem:[%s1432_s2 + $0x18] sm:$0xff]   ;;  %v34_v6 = vld [vmem:[%s1434_s1 + $0x10] sm:$0xff] }
   0x3   :  { %1006 = vmatpush3.bf16.msra.mxu0 %v1107_v0  ;;  %1013 = vmatprep.mubr.msk.bf16.mxu0 %vm125_vm0, %v1196_v4  ;;  %v36_v7 = vld [vmem:[%s1434_s1 + $0x20] sm:$0xff]  ;;  %v35_v8 = vld [vmem:[%s1434_s1 + $0x18] sm:$0xff]  ;;  %v37_v9 = vld [vmem:[%s1434_s1 + $0x28] sm:$0xff] }
   0x4   :  { %1007 = vmatprep.subr.bf16.mxu0 %v1108_v2  ;;  %215 = vperm.xlu0 %1105, %v34_v6   ;;  %v1218_v10 = vld [vmem:[%s1433_s0 + $0x8] sm:$0xff]   ;;  %v32_v11 = vld [vmem:[%s1434_s1] sm:$0xff]  ;;  %v1229_v13 = vld [vmem:[%s1433_s0 + $0x10] sm:$0xff]  }
   0x5   :  { %225 = vperm.xlu1 %1106, %v36_v7   ;;  %v33_v12 = vld [vmem:[%s1434_s1 + $0x8] sm:$0xff]  ;;  %v1115_v14 = vld [vmem:[%s1435_s3] sm:$0xff]   ;;  %v38_v15 = vld [vmem:[%s1434_s1 + $0x30] sm:$0xff] }
   0x6   :  { %1021 = vmatprep.subr.bf16.mxu1 %v1115_v14  ;;  %v39_v16 = vld [vmem:[%s1434_s1 + $0x38] sm:$0xff]  ;;  %v1116_v17 = vld [vmem:[%s1435_s3 + $0x8] sm:$0xff]   ;;  %s1144_s1 = smov 32   ;;  %v1117_v19 = vld [vmem:[%s1435_s3 + $0x10] sm:$0xff]  }
   0x7   :  { %1008 = vmatpush3.bf16.msra.mxu0 %v1108_v2  ;;  %1022 = vmatpush3.bf16.msra.mxu1 %v1115_v14  ;;  %v1250_v18 = vld [vmem:[%s1433_s0 + $0x18] sm:$0xff]   ;;  %v1118_v20 = vld [vmem:[%s1435_s3 + $0x20] sm:$0xff]   ;;  %v1120_v23 = vld [vmem:[%s1435_s3 + $0x28] sm:$0xff]  }
   0x8   :  { %1009 = vmatprep.subr.bf16.mxu0 %v1109_v3  ;;  %220 = vperm.xlu0 %1105, %v35_v8   ;;  %v1119_v22 = vld [vmem:[%s1435_s3 + $0x18] sm:$0xff]   ;;  %v1121_v24 = vld [vmem:[%s1435_s3 + $0x30] sm:$0xff]   ;;  %v1332_v7 = vld [vmem:[%s1436_s4] sm:$0xf] }
   0x9   :  { %230 = vperm.xlu1 %1106, %v37_v9   ;;  %1023 = vmatprep.subr.bf16.mxu1 %v1116_v17  ;;  %v1122_v25 = vld [vmem:[%s1435_s3 + $0x38] sm:$0xff]  }
   0xb   :  { %1010 = vmatpush3.bf16.msra.mxu0 %v1109_v3  ;;  %1024 = vmatpush3.bf16.msra.mxu1 %v1116_v17 }
   0xc   :  { %1011 = vmatprep.subr.bf16.mxu0 %v1110_v5  ;;  %205 = vperm.xlu0 %1105, %v32_v11  }
   0xd   :  { %210 = vperm.xlu1 %1106, %v33_v12   ;;  %1025 = vmatprep.subr.bf16.mxu1 %v1117_v19 }
   0xf   :  { %1012 = vmatpush3.bf16.msra.mxu0 %v1110_v5  ;;  %1026 = vmatpush3.bf16.msra.mxu1 %v1117_v19 }
  0x10   :  { %235 = vperm.xlu0 %1105, %v38_v15   ;;  %1033 = vmatprep.subr.bf16.mxu0 %v1145_v21 }
  0x11   :  { %240 = vperm.xlu1 %1106, %v39_v16   ;;  %1027 = vmatprep.subr.bf16.mxu1 %v1119_v22 }
  0x12   :  { %1014 = vmatmul.mubr.msk.bf16.vlgmr.msra.gmra.mrb[0].mxu0 %vm125_vm0, %v1218_v10 }
  0x13   :  { %1017 = vmatprep.mubr.msk.bf16.mxu0 %vm125_vm0, %v1229_v13  ;;  %1034 = vmatpush3.bf16.msra.mxu0 %v1118_v20 }
  0x14   :  { %257 = vrot.lane.b32.xlu0 %v1108_v2, %s1144_s1  ;;  %1035 = vmatprep.subr.bf16.mxu0 %v1145_v21 }
  0x15   :  { %259 = vrot.lane.b32.xlu1 %v1109_v3, %s1144_s1  ;;  %1028 = vmatpush3.bf16.msra.mxu1 %v1119_v22 }
  0x17   :  { %1036 = vmatpush3.bf16.msra.mxu0 %v1120_v23 }
  0x18   :  { %255 = vrot.lane.b32.xlu0 %v1107_v0, %s1144_s1  ;;  %1037 = vmatprep.subr.bf16.mxu0 %v1145_v21 }
  0x19   :  { %261 = vrot.lane.b32.xlu1 %v1110_v5, %s1144_s1 }
  0x1a   :  { %1018 = vmatmul.mubr.msk.bf16.gmra.mrb[4].mxu0 %vm125_vm0, %v1250_v18 }
  0x1b   :  { %1038 = vmatpush3.bf16.msra.mxu0 %v1121_v24  ;;  %1041 = vmatprep.mubr.msk.bf16.mxu0 %vm1146_vm1, %v1145_v21 }
  0x1c   :  { %1039 = vmatprep.subr.bf16.mxu0 %v1145_v21 }
  0x1f   :  { %1040 = vmatpush3.bf16.msra.mxu0 %v1122_v25 }
  0x20   :  { %1081 = vmatprep.subr.bf16.mxu0 %v1145_v21 }
  0x83   :  { %v1283_v26 = vpop.permute.xlu0 %215 }
  0x84   :  { %v1287_v28 = vpop.permute.xlu1 %225 }
  0x87   :  { %v1285_v27 = vpop.permute.xlu0 %220 }
  0x88   :  { %v1291_v30 = vpop.permute.xlu1 %230 }
  0x8b   :  { %v1289_v29 = vpop.permute.xlu0 %205 }
  0x8c   :  { %v1295_v32 = vpop.permute.xlu1 %210 }
  0x8f   :  { %v1293_v31 = vpop.permute.xlu0 %235 }
  0x90   :  { %v1297_v36 = vpop.permute.xlu1 %240 }
  0x93   :  { %v258_v33 = vpop.permute.xlu0 %257 }
  0x94   :  { %v260_v46 = vpop.permute.xlu1 %259 }
  0x97   :  { %v256_v44 = vpop.permute.xlu0 %255 }
  0x98   :  { %v262_v57 = vpop.permute.xlu1 %261 }
  0xe5   :  { %v1015_v34 = vpop.f32.mrb[0].mxu0 }
  0xe6   :  { %v172_v35 = vpop.f32.mrb[1].mxu0  ;;  %v245_v38 = vmul.f32 %v1015_v34, %v1283_v26 }
  0xe7   :  { %v1016_v37 = vpop.f32.mrb[2].mxu0  ;;  %v243_v41 = vmul.f32 %v1289_v29, %v172_v35 }
  0xe8   :  { %v246_v39 = vmul.f32 %v1016_v37, %v1285_v27  ;;  %v175_v40 = vpop.f32.mrb[3].mxu0 }
  0xe9   :  { %v244_v42 = vmul.f32 %v1295_v32, %v175_v40 }
  0xea   :  { %v252_v43 = vpack.c.bf16 %v246_v39, %v245_v38 }
  0xeb   :  { %v251_v45 = vpack.c.bf16 %v244_v42, %v243_v41 }
  0xec   :  { %v269_v49 = vsel %vm263_vm2, %v252_v43, %v258_v33 }
  0xed   :  { %v1019_v47 = vpop.f32.mrb[4].mxu0  ;;  %v266_v48 = vsel %vm263_vm2, %v251_v45, %v256_v44  ;;  %v367_v63 = vrot.slane %v269_v49, 4  ;;  %v1125_v45 = vld [vmem:[%s1435_s3 + $0x60] sm:$0xff]  }
  0xee   :  { %v188_v50 = vpop.f32.mrb[5].mxu0  ;;  %1029 = vmatprep.mubr.msk.bf16.mxu1 %vm125_vm0, %v266_v48  ;;  %v249_v52 = vmul.f32 %v1019_v47, %v1293_v31 }
  0xef   :  { %v1020_v51 = vpop.f32.mrb[6].mxu0  ;;  %1030 = vmatmul.mubr.msk.bf16.vlgmr.msra.gmra.mrb[0].mxu1 %vm125_vm0, %v269_v49  ;;  %v247_v55 = vmul.f32 %v1287_v28, %v188_v50 }
  0xf0   :  { %v250_v53 = vmul.f32 %v1020_v51, %v1297_v36  ;;  %v191_v54 = vpop.f32.mrb[7].mxu0  ;;  %1061 = vmatprep.mubr.msk.bf16.mxu1 %vm125_vm0, %v1196_v4  ;;  %v276_v4 = vlaneseq }
  0xf1   :  { %v248_v56 = vmul.f32 %v1291_v30, %v191_v54 }
  0xf2   :  { %v254_v58 = vpack.c.bf16 %v250_v53, %v249_v52  ;;  %v1326_v5 = vshrl.u32 %v276_v4, 7 }
  0xf3   :  { %v253_v59 = vpack.c.bf16 %v248_v56, %v247_v55 }
  0xf4   :  { %v275_v60 = vsel %vm263_vm2, %v254_v58, %v262_v57  ;;  %v278_v6 = vsub.s32 0, %v1326_v5  ;;  %v361_v16 = vsub.s32 1, %v1326_v5 }
  0xf5   :  { %v272_v61 = vsel %vm263_vm2, %v253_v59, %v260_v46  ;;  %v370_v62 = vrot.slane %v275_v60, 4  ;;  %v1123_v60 = vld [vmem:[%s1435_s3 + $0x40] sm:$0xff]  }
  0xf6   :  { %v368_v0 = vrot.slane %v272_v61, 4  ;;  %v279_v8 = vrot.slane %v1332_v7, %v278_v6  ;;  %v362_v22 = vrot.slane %v1332_v7, %v361_v16  ;;  %v1124_v61 = vld [vmem:[%s1435_s3 + $0x48] sm:$0xff]  }
  0xf8   :  { %v369_v2 = vsel %vm366_vm3, %v367_v63, %v368_v0  ;;  %v371_v3 = vsel %vm366_vm3, %v368_v0, %v370_v62  ;;  %v1127_v63 = vld [vmem:[%s1435_s3 + $0x58] sm:$0xff]  }
  0xf9   :  { %1042 = vmatmul.mubr.msk.bf16.vlgmr.msra.gmra.mrb[8].mxu0 %vm125_vm0, %v369_v2 }
  0xfa   :  { %1045 = vmatprep.mubr.msk.bf16.mxu0 %vm1146_vm1, %v1145_v21  ;;  %1082 = vmatpush3.bf16.msra.mxu0 %v1125_v45  ;;  %v573_v45 = vsub.s32 2, %v1326_v5 }
  0xfb   :  { %1083 = vmatprep.subr.bf16.mxu0 %v1145_v21 }
 0x101   :  { %1046 = vmatmul.mubr.msk.bf16.gmra.mrb[12].mxu0 %vm125_vm0, %v371_v3 }
 0x102   :  { %1049 = vmatprep.mubr.msk.bf16.mxu0 %vm1146_vm1, %v1145_v21 }
 0x109   :  { %1050 = vmatmul.mubr.msk.bf16.gmra.mrb[16].mxu0 %vm125_vm0, %v370_v62  ;;  %v1126_v62 = vld [vmem:[%s1435_s3 + $0x50] sm:$0xff]  }
 0x10a   :  { %1089 = vmatprep.mubr.msk.bf16.mxu0 %vm1146_vm1, %v1145_v21 }
 0x1c2   :  { %v1031_v9 = vpop.f32.mrb[0].mxu1 }
 0x1c3   :  { %v342_v11 = vpop.f32.mrb[1].mxu1  ;;  %v351_v24 = vadd.f32 %v1031_v9, %v279_v8 }
 0x1c4   :  { %v343_v12 = vadd.f32 %v342_v11, %v279_v8  ;;  %v1032_v14 = vpop.f32.mrb[2].mxu1 }
 0x1c5   :  { %v345_v15 = vpop.f32.mrb[3].mxu1  ;;  %v358_v37 = vmax.f32 %v351_v24, 0.0 }
 0x1c6   :  { %v346_v17 = vadd.f32 %v345_v15, %v279_v8  ;;  %v356_v19 = vmax.f32 %v343_v12, 0.0 }
 0x1c8   :  { %v357_v20 = vmax.f32 %v346_v17, 0.0 }
 0x1ca   :  { %v466_v23 = vpack.c.bf16 %v357_v20, %v356_v19 }
 0x1cc   :  { %v439_v25 = vpop.f32.mrb[8].mxu0  ;;  %1053 = vmatprep.subr.bf16.mxu1 %v466_v23 }
 0x1cd   :  { %v440_v33 = vadd.f32 %v439_v25, %v362_v22  ;;  %v1043_v34 = vpop.f32.mrb[9].mxu0  ;;  %1054 = vmatpush3.bf16.msra.mxu1 %v466_v23 }
 0x1ce   :  { %v442_v35 = vpop.f32.mrb[10].mxu0 }
 0x1cf   :  { %v461_v38 = vmax.f32 %v440_v33, 0.0  ;;  %v1044_v39 = vpop.f32.mrb[11].mxu0  ;;  %v443_v41 = vadd.f32 %v442_v35, %v362_v22 }
 0x1d1   :  { %v467_v40 = vpack.c.bf16 %v461_v38, %v358_v37  ;;  %v462_v47 = vmax.f32 %v443_v41, 0.0 }
 0x1d3   :  { %553 = vrot.lane.b32.xlu0 %v467_v40, %s1144_s1  ;;  %1055 = vmatprep.subr.bf16.mxu1 %v467_v40 }
 0x1d4   :  { %v447_v42 = vpop.f32.mrb[12].mxu0  ;;  %1056 = vmatpush3.bf16.msra.mxu1 %v467_v40 }
 0x1d5   :  { %v448_v43 = vadd.f32 %v447_v42, %v362_v22  ;;  %v1047_v44 = vpop.f32.mrb[13].mxu0  ;;  %v1136_v42 = vld [vmem:[%s1437_s5 + $0x14] ss:$8 sps:$4 sm:$0xff]  }
 0x1d6   :  { %v450_v46 = vpop.f32.mrb[14].mxu0  ;;  %v1137_v44 = vld [vmem:[%s1437_s5 + $0x20] ss:$8 sps:$4 sm:$0xff]  }
 0x1d7   :  { %v463_v48 = vmax.f32 %v448_v43, 0.0  ;;  %551 = vrot.lane.b32.xlu0 %v466_v23, %s1144_s1  ;;  %v1048_v49 = vpop.f32.mrb[15].mxu0  ;;  %v451_v51 = vadd.f32 %v450_v46, %v362_v22  ;;  %v1139_v43 = vld [vmem:[%s1437_s5 + $0x24] ss:$8 sps:$4 sm:$0xff]   ;;  %v574_v46 = vrot.slane %v1332_v7, %v573_v45 }
 0x1d9   :  { %v468_v50 = vpack.c.bf16 %v463_v48, %v462_v47  ;;  %v464_v56 = vmax.f32 %v451_v51, 0.0 }
 0x1db   :  { %555 = vrot.lane.b32.xlu1 %v468_v50, %s1144_s1  ;;  %1057 = vmatprep.subr.bf16.mxu1 %v468_v50 }
 0x1dc   :  { %v455_v52 = vpop.f32.mrb[16].mxu0  ;;  %1058 = vmatpush3.bf16.msra.mxu1 %v468_v50 }
 0x1dd   :  { %v456_v53 = vadd.f32 %v455_v52, %v362_v22  ;;  %v1051_v54 = vpop.f32.mrb[17].mxu0  ;;  %v1140_v52 = vld [vmem:[%s1437_s5 + $0x30] ss:$8 sps:$4 sm:$0xff]  }
 0x1de   :  { %v458_v55 = vpop.f32.mrb[18].mxu0 }
 0x1df   :  { %v465_v57 = vmax.f32 %v456_v53, 0.0  ;;  %v1052_v58 = vpop.f32.mrb[19].mxu0  ;;  %v1142_v53 = vld [vmem:[%s1437_s5 + $0x34] ss:$8 sps:$4 sm:$0xff]   ;;  %v653_v55 = vsub.s32 3, %v1326_v5 }
 0x1e1   :  { %v469_v59 = vpack.c.bf16 %v465_v57, %v464_v56  ;;  %v654_v57 = vrot.slane %v1332_v7, %v653_v55 }
 0x1e3   :  { %557 = vrot.lane.b32.xlu1 %v469_v59, %s1144_s1  ;;  %1059 = vmatprep.subr.bf16.mxu1 %v469_v59 }
 0x1e4   :  { %1060 = vmatpush3.bf16.msra.mxu1 %v469_v59 }
 0x1e5   :  { %1069 = vmatprep.subr.bf16.mxu1 %v1123_v60 }
 0x1e7   :  { %1062 = vmatmul.mubr.msk.bf16.vlgmr.msra.gmra.mrb[4].mxu1 %vm125_vm0, %v1218_v10  ;;  %v1128_v10 = vld [vmem:[%s1435_s3 + $0x68] sm:$0xff]  }
 0x1e8   :  { %1065 = vmatprep.mubr.msk.bf16.mxu1 %vm125_vm0, %v1229_v13  ;;  %1070 = vmatpush3.bf16.msra.mxu1 %v1123_v60  ;;  %v1129_v13 = vld [vmem:[%s1435_s3 + $0x70] sm:$0xff]  }
 0x1e9   :  { %1071 = vmatprep.subr.bf16.mxu1 %v1124_v61  ;;  %1084 = vmatpush3.bf16.msra.mxu0 %v1128_v10 }
 0x1ea   :  { %1085 = vmatprep.subr.bf16.mxu0 %v1145_v21 }
 0x1ec   :  { %1072 = vmatpush3.bf16.msra.mxu1 %v1124_v61 }
 0x1ed   :  { %1073 = vmatprep.subr.bf16.mxu1 %v1126_v62  ;;  %1086 = vmatpush3.bf16.msra.mxu0 %v1129_v13 }
 0x1ee   :  { %1087 = vmatprep.subr.bf16.mxu0 %v1145_v21 }
 0x1ef   :  { %1066 = vmatmul.mubr.msk.bf16.gmra.mrb[8].mxu1 %vm125_vm0, %v1250_v18  ;;  %v1130_v18 = vld [vmem:[%s1435_s3 + $0x78] sm:$0xff]  }
 0x1f0   :  { %1074 = vmatpush3.bf16.msra.mxu1 %v1126_v62 }
 0x1f1   :  { %1075 = vmatprep.subr.bf16.mxu1 %v1127_v63  ;;  %1088 = vmatpush3.bf16.msra.mxu0 %v1130_v18 }
 0x1f4   :  { %1076 = vmatpush3.bf16.msra.mxu1 %v1127_v63 }
 0x245   :  { %v554_v2 = vpop.permute.xlu0 %553 }
 0x249   :  { %v552_v16 = vpop.permute.xlu0 %551 }
 0x24d   :  { %v556_v23 = vpop.permute.xlu1 %555 }
 0x255   :  { %v558_v34 = vpop.permute.xlu1 %557 }
 0x2ba   :  { %v1063_v0 = vpop.f32.mrb[4].mxu1 }
 0x2bb   :  { %v504_v3 = vpop.f32.mrb[5].mxu1  ;;  %v537_v6 = vmul.f32 %v1063_v0, %v1283_v26 }
 0x2bc   :  { %v1064_v4 = vpop.f32.mrb[6].mxu1  ;;  %v535_v11 = vmul.f32 %v504_v3, %v1289_v29 }
 0x2bd   :  { %v538_v8 = vmul.f32 %v1064_v4, %v1285_v27  ;;  %v507_v9 = vpop.f32.mrb[7].mxu1 }
 0x2be   :  { %v536_v12 = vmul.f32 %v507_v9, %v1295_v32 }
 0x2bf   :  { %v544_v14 = vpack.c.bf16 %v538_v8, %v537_v6 }
 0x2c0   :  { %v543_v15 = vpack.c.bf16 %v536_v12, %v535_v11 }
 0x2c1   :  { %v564_v20 = vsel %vm263_vm2, %v544_v14, %v554_v2 }
 0x2c2   :  { %v1067_v17 = vpop.f32.mrb[8].mxu1  ;;  %v561_v19 = vsel %vm263_vm2, %v543_v15, %v552_v16  ;;  %v658_v40 = vrot.slane %v564_v20, 4 }
 0x2c3   :  { %v520_v22 = vpop.f32.mrb[9].mxu1  ;;  %1077 = vmatprep.mubr.msk.bf16.mxu1 %vm125_vm0, %v561_v19  ;;  %v541_v27 = vmul.f32 %v1067_v17, %v1293_v31 }
 0x2c4   :  { %v1068_v26 = vpop.f32.mrb[10].mxu1  ;;  %1078 = vmatmul.mubr.msk.bf16.vlgmr.msra.gmra.mrb[12].mxu1 %vm125_vm0, %v564_v20  ;;  %v539_v24 = vmul.f32 %v520_v22, %v1287_v28  ;;  %v1131_v28 = vld [vmem:[%s1437_s5] ss:$8 sps:$4 sm:$0xff]  }
 0x2c5   :  { %v542_v29 = vmul.f32 %v1068_v26, %v1297_v36  ;;  %v523_v32 = vpop.f32.mrb[11].mxu1  ;;  %872 = vmatprep.mubr.bf16.mxu1 %v1143_v1 }
 0x2c6   :  { %v540_v25 = vmul.f32 %v523_v32, %v1291_v30  ;;  %v1133_v30 = vld [vmem:[%s1437_s5 + $0x4] ss:$8 sps:$4 sm:$0xff]  }
 0x2c7   :  { %v546_v33 = vpack.c.bf16 %v542_v29, %v541_v27  ;;  %840 = vmatprep.subr.bf16.mxu1 %v1133_v30 }
 0x2c8   :  { %v545_v35 = vpack.c.bf16 %v540_v25, %v539_v24  ;;  %841 = vmatpush1.bf16.msra.mxu1 %v1131_v28 }
 0x2c9   :  { %v570_v37 = vsel %vm263_vm2, %v546_v33, %v558_v34  ;;  %842 = vmatprep.subr.bf16.mxu1 %v1136_v42 }
 0x2ca   :  { %v661_v38 = vrot.slane %v570_v37, 4  ;;  %v567_v39 = vsel %vm263_vm2, %v545_v35, %v556_v23 }
 0x2cb   :  { %v659_v41 = vrot.slane %v567_v39, 4 }
 0x2cd   :  { %v660_v31 = vsel %vm366_vm3, %v658_v40, %v659_v41  ;;  %v662_v36 = vsel %vm366_vm3, %v659_v41, %v661_v38 }
 0x2ce   :  { %1090 = vmatmul.mubr.msk.bf16.vlgmr.msra.gmra.mrb[20].mxu0 %vm125_vm0, %v660_v31 }
 0x2cf   :  { %1093 = vmatprep.mubr.msk.bf16.mxu0 %vm1146_vm1, %v1145_v21 }
 0x2d6   :  { %1094 = vmatmul.mubr.msk.bf16.gmra.mrb[24].mxu0 %vm125_vm0, %v662_v36 }
 0x2d7   :  { %1097 = vmatprep.mubr.msk.bf16.mxu0 %vm1146_vm1, %v1145_v21  ;;  %v1134_v21 = vld [vmem:[%s1437_s5 + $0x10] ss:$8 sps:$4 sm:$0xff]  }
 0x2d8   :  { %843 = vmatpush1.bf16.msra.mxu1 %v1134_v21 }
 0x2d9   :  { %844 = vmatprep.subr.bf16.mxu1 %v1139_v43 }
 0x2dc   :  { %845 = vmatpush1.bf16.msra.mxu1 %v1137_v44 }
 0x2dd   :  { %846 = vmatprep.subr.bf16.mxu1 %v1142_v53 }
 0x2de   :  { %1098 = vmatmul.mubr.msk.bf16.gmra.mrb[28].mxu0 %vm125_vm0, %v661_v38 }
 0x2e0   :  { %847 = vmatpush1.bf16.msra.mxu1 %v1140_v52 }
 0x397   :  { %v1079_v47 = vpop.f32.mrb[12].mxu1 }
 0x398   :  { %v637_v48 = vpop.f32.mrb[13].mxu1  ;;  %v646_v56 = vadd.f32 %v1079_v47, %v574_v46 }
 0x399   :  { %v638_v49 = vadd.f32 %v637_v48, %v574_v46  ;;  %v1080_v50 = vpop.f32.mrb[14].mxu1 }
 0x39a   :  { %v640_v51 = vpop.f32.mrb[15].mxu1 }
 0x39b   :  { %752 = vxpose.xlu0.b32.start [1/8] (short) (narrow) %v638_v49, 32  ;;  %v641_v54 = vadd.f32 %v640_v51, %v574_v46 }
 0x39f   :  { %753 = vxpose.xlu0.b32.cont [2/8] (short) (narrow) %v641_v54, 32 }
 0x3a1   :  { %v730_v58 = vpop.f32.mrb[20].mxu0 }
 0x3a2   :  { %v1091_v59 = vpop.f32.mrb[21].mxu0  ;;  %v731_v62 = vadd.f32 %v730_v58, %v654_v57 }
 0x3a3   :  { %754 = vxpose.xlu0.b32.cont [3/8] (short) (narrow) %v646_v56, 32  ;;  %v733_v60 = vpop.f32.mrb[22].mxu0 }
 0x3a4   :  { %v1092_v61 = vpop.f32.mrb[23].mxu0  ;;  %v734_v63 = vadd.f32 %v733_v60, %v654_v57 }
 0x3a7   :  { %755 = vxpose.xlu0.b32.cont [4/8] (short) (narrow) %v731_v62, 32 }
 0x3a9   :  { %v738_v10 = vpop.f32.mrb[24].mxu0 }
 0x3aa   :  { %v1095_v13 = vpop.f32.mrb[25].mxu0  ;;  %v739_v5 = vadd.f32 %v738_v10, %v654_v57 }
 0x3ab   :  { %756 = vxpose.xlu0.b32.cont [5/8] (short) (narrow) %v734_v63, 32  ;;  %v741_v18 = vpop.f32.mrb[26].mxu0 }
 0x3ac   :  { %v1096_v0 = vpop.f32.mrb[27].mxu0  ;;  %v742_v2 = vadd.f32 %v741_v18, %v654_v57 }
 0x3af   :  { %757 = vxpose.xlu0.b32.cont [6/8] (short) (narrow) %v739_v5, 32 }
 0x3b1   :  { %v746_v3 = vpop.f32.mrb[28].mxu0 }
 0x3b2   :  { %v1099_v4 = vpop.f32.mrb[29].mxu0  ;;  %v747_v8 = vadd.f32 %v746_v3, %v654_v57 }
 0x3b3   :  { %758 = vxpose.xlu0.b32.cont [7/8] (short) (narrow) %v742_v2, 32  ;;  %v749_v7 = vpop.f32.mrb[30].mxu0 }
 0x3b4   :  { %v1100_v6 = vpop.f32.mrb[31].mxu0 }
 0x3b7   :  { %759 = vxpose.xlu0.b32.end [8/8] (short) (narrow) %v747_v8, 32 }
 0x41b   :  { %v768_v9 = vpop.trf.xlu0 }
 0x41f   :  { %v769_v11 = vpop.trf.xlu0 }
 0x420   :  { %v784_v12 = vpack.c.bf16 %v769_v11, %v768_v9 }
 0x422   :  { %961 = vmatmul.mubr.msk.bf16.vlgmr.msra.gmra.mrb[16].mxu1 %vm125_vm0, %v784_v12 }
 0x423   :  { %v770_v14 = vpop.trf.xlu0  ;;  %882 = vmatprep.mubr.bf16.mxu1 %v1143_v1 }
 0x427   :  { %v771_v15 = vpop.trf.xlu0 }
 0x428   :  { %v785_v16 = vpack.c.bf16 %v771_v15, %v770_v14 }
 0x42a   :  { %962 = vmatmul.mubr.msk.bf16.gmra.mrb[20].mxu1 %vm125_vm0, %v785_v16 }
 0x4f5   :  { %v874_v17 = vpop.f32.mrb[16].mxu1 }
 0x4f6   :  { %v876_v19 = vpop.f32.mrb[17].mxu1 }
 0x4f7   :  { %v893_v20 = vmul.f32 %v876_v19, %v874_v17  ;;  %v878_v22 = vpop.f32.mrb[18].mxu1 }
 0x4f8   :  { %v880_v23 = vpop.f32.mrb[19].mxu1 }
 0x4f9   :  { %v894_v26 = vmul.f32 %v880_v23, %v878_v22 }
 0x4fb   :  { %v897_v27 = vadd.f32 %v894_v26, %v893_v20 }
 0x4fd   :  { %v884_v29 = vpop.f32.mrb[20].mxu1 }
 0x4fe   :  { %v886_v32 = vpop.f32.mrb[21].mxu1 }
 0x4ff   :  { %v895_v24 = vmul.f32 %v886_v32, %v884_v29  ;;  %v888_v25 = vpop.f32.mrb[22].mxu1 }
 0x500   :  { %v890_v33 = vpop.f32.mrb[23].mxu1 }
 0x501   :  { %v898_v34 = vadd.f32 %v897_v27, %v895_v24  ;;  %v896_v35 = vmul.f32 %v890_v33, %v888_v25 }
 0x503   :  { %v899_v37 = vadd.f32 %v898_v34, %v896_v35 }
 0x505   :  { %v900_v1 = vrot.slane %v899_v37, 4 }
 0x507   :  { %v901_v38 = vadd.f32 %v900_v1, %v899_v37 }
 0x509   :  { %v902_v39 = vrot.slane %v901_v38, 2 }
 0x50b   :  { %v903_v40 = vadd.f32 %v902_v39, %v901_v38 }
 0x50d   :  { %v904_v41 = vrot.slane %v903_v40, 1 }
 0x50f   :  { %v905_v31 = vadd.f32 %v904_v41, %v903_v40 }
 0x511   :  { %906 = vst [vmem:[%s1438_s6] sm:$0x1] %v905_v31 }

</bundles_post_ra>
